<compile_context>
chip_gen: v5e
topology: v5e:2x2
jax: 0.10.0
libtpu: 0.0.40
codegen_flags: <defaults>
</compile_context>

<pallas_src>
import functools

import jax
import jax.numpy as jnp
from jax.experimental import pallas as pl
from jax.experimental.pallas import tpu as pltpu


_VMEM_LIMIT_BYTES = 32 * 1024 * 1024  # safe on v5e/v6e/v7x, >> our tile budget


def _pick_tile_hw(hw, c, itemsize, max_tile_bytes=2 * 1024 * 1024, max_lanes=8192):
    """Largest multiple-of-128 divisor of `hw` within the VMEM/unroll budget."""
    if hw % 128 != 0:
        # Full-extent fallback: block last dim == full array dim is always legal.
        return hw
    budget_lanes = max(128, (max_tile_bytes // max(1, c * itemsize)) // 128 * 128)
    cap = min(hw, max_lanes, budget_lanes)
    best = 128
    t = 128
    while t <= cap:
        if hw % t == 0:
            best = t
        t += 128
    return best


def _stats_kernel(x_ref, gamma_ref, beta_ref, scale_ref, bias_ref,
                  acc_sum, acc_sq, *, eps, inv_count):
    """Pass 1: accumulate per-channel sum / sumsq, finalize scale & bias."""
    n = pl.program_id(0)
    t = pl.program_id(1)

    @pl.when((n == 0) & (t == 0))
    def _init():
        acc_sum[...] = jnp.zeros_like(acc_sum)
        acc_sq[...] = jnp.zeros_like(acc_sq)

    tile = x_ref.shape[-1]
    acc_w = acc_sum.shape[-1]
    s = acc_sum[...]
    q = acc_sq[...]
    if acc_w == 128:
        # Lane-shaped (C, 128) partial sums: per-128-lane VPU adds only; the
        # cross-lane reduce happens exactly once, in the epilogue below.
        for j in range(tile // 128):
            c = x_ref[:, pl.ds(j * 128, 128)].astype(jnp.float32)
            s = s + c
            q = q + c * c
    else:
        # Odd HW fallback (tile width not a multiple of 128): whole-tile reduce.
        c = x_ref[...].astype(jnp.float32)
        s = s + jnp.sum(c, axis=-1, keepdims=True)
        q = q + jnp.sum(c * c, axis=-1, keepdims=True)
    acc_sum[...] = s
    acc_sq[...] = q

    @pl.when((n == pl.num_programs(0) - 1) & (t == pl.num_programs(1) - 1))
    def _finalize():
        total = jnp.sum(acc_sum[...], axis=-1, keepdims=True)      # (C, 1)
        total_sq = jnp.sum(acc_sq[...], axis=-1, keepdims=True)    # (C, 1)
        mean = total * inv_count
        # f32 accumulation keeps E[x^2]-mean^2 well within 1e-4 tolerance;
        # clamp guards against tiny negative rounding before rsqrt.
        var = jnp.maximum(total_sq * inv_count - mean * mean, 0.0)
        inv_std = jax.lax.rsqrt(var + eps)
        g = gamma_ref[...]
        b = beta_ref[...]
        scale = g * inv_std
        scale_ref[...] = scale
        bias_ref[...] = b - mean * scale


def _apply_kernel(x_ref, scale_ref, bias_ref, o_ref):
    """Pass 2: y = x * scale + bias (per-channel scale/bias broadcast on lanes)."""
    x = x_ref[...].astype(jnp.float32)                 # (C, TILE_HW)
    y = x * scale_ref[...] + bias_ref[...]             # (C, 1) broadcasts
    o_ref[...] = y.astype(o_ref.dtype)


@functools.partial(jax.jit, static_argnames=("eps",))
def _batch_norm_2d(x_nchw, gamma, beta, eps=1e-5):
    """Training-mode BatchNorm2d forward (batch statistics) on NCHW input."""
    N, C, H, W = x_nchw.shape
    HW = H * W
    x3 = x_nchw.reshape(N, C, HW)                      # free view of NCHW
    g2 = gamma.reshape(C, 1).astype(jnp.float32)
    b2 = beta.reshape(C, 1).astype(jnp.float32)

    itemsize = jnp.dtype(x_nchw.dtype).itemsize
    tile = _pick_tile_hw(HW, C, itemsize)
    n_hw = HW // tile
    acc_w = 128 if tile % 128 == 0 else 1
    inv_count = 1.0 / float(N * HW)
    grid = (N, n_hw)

    x_spec = pl.BlockSpec((None, C, tile), lambda n, t: (n, 0, t))
    cvec_spec = pl.BlockSpec((C, 1), lambda n, t: (0, 0))

    # ---- Pass 1: per-channel statistics -> fused (scale, bias) --------------
    scale, bias = pl.pallas_call(
        functools.partial(_stats_kernel, eps=float(eps), inv_count=inv_count),
        out_shape=(jax.ShapeDtypeStruct((C, 1), jnp.float32),
                   jax.ShapeDtypeStruct((C, 1), jnp.float32)),
        grid=grid,
        in_specs=[x_spec, cvec_spec, cvec_spec],
        out_specs=(cvec_spec, cvec_spec),
        scratch_shapes=[pltpu.VMEM((C, acc_w), jnp.float32),
                        pltpu.VMEM((C, acc_w), jnp.float32)],
        compiler_params=pltpu.CompilerParams(
            dimension_semantics=("arbitrary", "arbitrary"),
            vmem_limit_bytes=_VMEM_LIMIT_BYTES),
    )(x3, g2, b2)

    # ---- Pass 2: apply y = x * scale + bias (lane-dense output tiles) -------
    out3 = pl.pallas_call(
        _apply_kernel,
        out_shape=jax.ShapeDtypeStruct((N, C, HW), x_nchw.dtype),
        grid=grid,
        in_specs=[x_spec, cvec_spec, cvec_spec],
        out_specs=pl.BlockSpec((None, C, tile), lambda n, t: (n, 0, t)),
        compiler_params=pltpu.CompilerParams(
            dimension_semantics=("parallel", "parallel"),
            vmem_limit_bytes=_VMEM_LIMIT_BYTES),
    )(x3, scale, bias)

    return out3.reshape(N, C, H, W)


class DualBN2dPallas:
    """JAX/Pallas port of DualBN2d (training-mode BatchNorm2d forward)."""

    def __init__(self, num_features, eps=1e-5):
        self.eps = eps
        # nn.BatchNorm2d default init: weight=1, bias=0.
        self.gamma_none = jnp.ones((num_features,), jnp.float32)
        self.beta_none = jnp.zeros((num_features,), jnp.float32)
        self.gamma_task = jnp.ones((num_features,), jnp.float32)
        self.beta_task = jnp.zeros((num_features,), jnp.float32)

    def __call__(self, x, _lambda):
        if _lambda is None:
            return _batch_norm_2d(x, self.gamma_none, self.beta_none, eps=self.eps)
        else:
            return _batch_norm_2d(x, self.gamma_task, self.beta_task, eps=self.eps)


def _ref_bn(x, gamma, beta, eps=1e-5):
    """Pure-JAX training-mode BatchNorm2d reference."""
    mean = x.mean(axis=(0, 2, 3), keepdims=True)
    var = ((x - mean) ** 2).mean(axis=(0, 2, 3), keepdims=True)
    xhat = (x - mean) / jnp.sqrt(var + eps)
    return xhat * gamma.reshape(1, -1, 1, 1) + beta.reshape(1, -1, 1, 1)


if __name__ == "__main__":
    key = jax.random.PRNGKey(0)
    kx, kl, kx2, kg, kb, kx3 = jax.random.split(key, 6)

    # --- Case 1: module API, both branches, default gamma=1 / beta=0 ---------
    N, C, H, W = 2, 4, 16, 16
    x = jax.random.normal(kx, (N, C, H, W), dtype=jnp.float32)
    lam = jax.random.uniform(kl, (N,), dtype=jnp.float32)

    module = DualBN2dPallas(num_features=C)
    out_none = jax.block_until_ready(module(x, None))   # BN_none branch
    out_task = jax.block_until_ready(module(x, lam))    # BN_task branch

    ref = _ref_bn(x, module.gamma_none, module.beta_none)
    assert out_none.shape == (N, C, H, W)
    assert jnp.allclose(out_none, ref, atol=1e-4), "BN_none mismatch"
    assert jnp.allclose(out_task, ref, atol=1e-4), "BN_task mismatch"

    # --- Case 2: non-trivial gamma/beta, multi-tile HW accumulation ----------
    N2, C2, H2, W2 = 2, 8, 16, 24                       # HW = 384 -> 3 tiles of 128
    x2 = jax.random.normal(kx2, (N2, C2, H2, W2), dtype=jnp.float32)
    gamma2 = jax.random.normal(kg, (C2,), dtype=jnp.float32)
    beta2 = jax.random.normal(kb, (C2,), dtype=jnp.float32)
    out2 = jax.block_until_ready(_batch_norm_2d(x2, gamma2, beta2))
    ref2 = _ref_bn(x2, gamma2, beta2)
    assert jnp.allclose(out2, ref2, atol=1e-4), "gamma/beta broadcast mismatch"

    # --- Case 3: HW not a multiple of 128 (full-extent fallback path) --------
    x3 = jax.random.normal(kx3, (2, 4, 10, 10), dtype=jnp.float32)
    out3 = jax.block_until_ready(
        _batch_norm_2d(x3, jnp.ones((4,), jnp.float32), jnp.zeros((4,), jnp.float32)))
    ref3 = _ref_bn(x3, jnp.ones((4,), jnp.float32), jnp.zeros((4,), jnp.float32))
    assert jnp.allclose(out3, ref3, atol=1e-4), "odd-HW fallback mismatch"

    print("KERNEL_OK")
</pallas_src>

<mosaic_0001>
module attributes {stable_mosaic.version = 11 : i64} {
  func.func @_apply_kernel(%arg0: i32, %arg1: i32, %arg2: memref<1x4x256xf32, #tpu.memory_space<vmem>>, %arg3: memref<4x1xf32, #tpu.memory_space<vmem>>, %arg4: memref<4x1xf32, #tpu.memory_space<vmem>>, %arg5: memref<1x4x256xf32, #tpu.memory_space<vmem>>) attributes {dimension_semantics = [#tpu.dimension_semantics<parallel>, #tpu.dimension_semantics<parallel>], iteration_bounds = array<i64: 2, 1>, scalar_prefetch = 0 : i64, scratch_operands = 0 : i64, tpu.core_type = #tpu.core_type<tc>, window_params = [{transform_indices = @transform_0, window_bounds = array<i64: 1, 4, 256>}, {pipeline_mode = #tpu.pipeline_mode<synchronous>, transform_indices = @transform_1, window_bounds = array<i64: 4, 1>}, {pipeline_mode = #tpu.pipeline_mode<synchronous>, transform_indices = @transform_2, window_bounds = array<i64: 4, 1>}, {transform_indices = @transform_3, window_bounds = array<i64: 1, 4, 256>}]} {
    %c0 = arith.constant 0 : index
    %c0_0 = arith.constant 0 : index
    %c0_1 = arith.constant 0 : index
    %0 = vector.load %arg2[%c0, %c0_0, %c0_1] : memref<1x4x256xf32, #tpu.memory_space<vmem>>, vector<1x4x256xf32>
    %1 = vector.shape_cast %0 : vector<1x4x256xf32> to vector<4x256xf32>
    %c0_2 = arith.constant 0 : index
    %c0_3 = arith.constant 0 : index
    %2 = vector.load %arg3[%c0_2, %c0_3] : memref<4x1xf32, #tpu.memory_space<vmem>>, vector<4x1xf32>
    %3 = vector.broadcast %2 : vector<4x1xf32> to vector<4x256xf32>
    %4 = arith.mulf %1, %3 : vector<4x256xf32>
    %c0_4 = arith.constant 0 : index
    %c0_5 = arith.constant 0 : index
    %5 = vector.load %arg4[%c0_4, %c0_5] : memref<4x1xf32, #tpu.memory_space<vmem>>, vector<4x1xf32>
    %6 = vector.broadcast %5 : vector<4x1xf32> to vector<4x256xf32>
    %7 = arith.addf %4, %6 : vector<4x256xf32>
    %c0_6 = arith.constant 0 : index
    %c0_7 = arith.constant 0 : index
    %c0_8 = arith.constant 0 : index
    %8 = vector.load %arg5[%c0_6, %c0_7, %c0_8] : memref<1x4x256xf32, #tpu.memory_space<vmem>>, vector<1x4x256xf32>
    %9 = vector.shape_cast %8 : vector<1x4x256xf32> to vector<4x256xf32>
    %10 = vector.shape_cast %7 : vector<4x256xf32> to vector<1x4x256xf32>
    tpu.vector_store %arg5[%c0_6, %c0_7, %c0_8], %10 {strides = array<i32>} : memref<1x4x256xf32, #tpu.memory_space<vmem>>, vector<1x4x256xf32>,
    return
  }
  func.func @transform_0(%arg0: i32, %arg1: i32) -> (i32, i32, i32) {
    %c0_i32 = arith.constant 0 : i32
    %c0_i32_0 = arith.constant 0 : i32
    return %arg0, %c0_i32, %arg1 : i32, i32, i32
  }
  func.func @transform_1(%arg0: i32, %arg1: i32) -> (i32, i32) {
    %c0_i32 = arith.constant 0 : i32
    %c0_i32_0 = arith.constant 0 : i32
    %c0_i32_1 = arith.constant 0 : i32
    return %c0_i32, %c0_i32_0 : i32, i32
  }
  func.func @transform_2(%arg0: i32, %arg1: i32) -> (i32, i32) {
    %c0_i32 = arith.constant 0 : i32
    %c0_i32_0 = arith.constant 0 : i32
    %c0_i32_1 = arith.constant 0 : i32
    return %c0_i32, %c0_i32_0 : i32, i32
  }
  func.func @transform_3(%arg0: i32, %arg1: i32) -> (i32, i32, i32) {
    %c0_i32 = arith.constant 0 : i32
    %c0_i32_0 = arith.constant 0 : i32
    return %arg0, %c0_i32, %arg1 : i32, i32, i32
  }
}

module attributes {stable_mosaic.version = 11 : i64} {
  func.func @_stats_kernel(%arg0: i32, %arg1: i32, %arg2: memref<1x4x256xf32, #tpu.memory_space<vmem>>, %arg3: memref<4x1xf32, #tpu.memory_space<vmem>>, %arg4: memref<4x1xf32, #tpu.memory_space<vmem>>, %arg5: memref<4x1xf32, #tpu.memory_space<vmem>>, %arg6: memref<4x1xf32, #tpu.memory_space<vmem>>, %arg7: memref<4x128xf32, #tpu.memory_space<vmem>>, %arg8: memref<4x128xf32, #tpu.memory_space<vmem>>) attributes {dimension_semantics = [#tpu.dimension_semantics<arbitrary>, #tpu.dimension_semantics<arbitrary>], iteration_bounds = array<i64: 2, 1>, scalar_prefetch = 0 : i64, scratch_operands = 2 : i64, tpu.core_type = #tpu.core_type<tc>, window_params = [{transform_indices = @transform_0, window_bounds = array<i64: 1, 4, 256>}, {pipeline_mode = #tpu.pipeline_mode<synchronous>, transform_indices = @transform_1, window_bounds = array<i64: 4, 1>}, {pipeline_mode = #tpu.pipeline_mode<synchronous>, transform_indices = @transform_2, window_bounds = array<i64: 4, 1>}, {pipeline_mode = #tpu.pipeline_mode<synchronous>, transform_indices = @transform_3, window_bounds = array<i64: 4, 1>}, {pipeline_mode = #tpu.pipeline_mode<synchronous>, transform_indices = @transform_4, window_bounds = array<i64: 4, 1>}]} {
    %c0_i32 = arith.constant 0 : i32
    %0 = arith.cmpi eq, %arg0, %c0_i32 : i32
    %c0_i32_0 = arith.constant 0 : i32
    %1 = arith.cmpi eq, %arg1, %c0_i32_0 : i32
    %2 = arith.andi %0, %1 : i1
    %3 = arith.extui %2 : i1 to i32
    %c0_i32_1 = arith.constant 0 : i32
    %4 = arith.cmpi ne, %3, %c0_i32_1 : i32
    scf.if %4 {
      %cst = arith.constant 0.000000e+00 : f32
      %24 = vector.broadcast %cst : f32 to vector<4x128xf32>
      %c0_16 = arith.constant 0 : index
      %c0_17 = arith.constant 0 : index
      %25 = vector.load %arg7[%c0_16, %c0_17] : memref<4x128xf32, #tpu.memory_space<vmem>>, vector<4x128xf32>
      tpu.vector_store %arg7[%c0_16, %c0_17], %24 {strides = array<i32>} : memref<4x128xf32, #tpu.memory_space<vmem>>, vector<4x128xf32>,
      %cst_18 = arith.constant 0.000000e+00 : f32
      %26 = vector.broadcast %cst_18 : f32 to vector<4x128xf32>
      %c0_19 = arith.constant 0 : index
      %c0_20 = arith.constant 0 : index
      %27 = vector.load %arg8[%c0_19, %c0_20] : memref<4x128xf32, #tpu.memory_space<vmem>>, vector<4x128xf32>
      tpu.vector_store %arg8[%c0_19, %c0_20], %26 {strides = array<i32>} : memref<4x128xf32, #tpu.memory_space<vmem>>, vector<4x128xf32>,
    } else {
    }
    %c0 = arith.constant 0 : index
    %c0_2 = arith.constant 0 : index
    %5 = vector.load %arg7[%c0, %c0_2] : memref<4x128xf32, #tpu.memory_space<vmem>>, vector<4x128xf32>
    %c0_3 = arith.constant 0 : index
    %c0_4 = arith.constant 0 : index
    %6 = vector.load %arg8[%c0_3, %c0_4] : memref<4x128xf32, #tpu.memory_space<vmem>>, vector<4x128xf32>
    %c0_5 = arith.constant 0 : index
    %c0_6 = arith.constant 0 : index
    %c0_7 = arith.constant 0 : index
    %7 = vector.load %arg2[%c0_5, %c0_6, %c0_7] : memref<1x4x256xf32, #tpu.memory_space<vmem>>, vector<1x4x128xf32>
    %8 = vector.shape_cast %7 : vector<1x4x128xf32> to vector<4x128xf32>
    %9 = arith.addf %5, %8 : vector<4x128xf32>
    %10 = arith.mulf %8, %8 : vector<4x128xf32>
    %11 = arith.addf %6, %10 : vector<4x128xf32>
    %c0_8 = arith.constant 0 : index
    %c0_9 = arith.constant 0 : index
    %c128 = arith.constant 128 : index
    %12 = vector.load %arg2[%c0_8, %c0_9, %c128] : memref<1x4x256xf32, #tpu.memory_space<vmem>>, vector<1x4x128xf32>
    %13 = vector.shape_cast %12 : vector<1x4x128xf32> to vector<4x128xf32>
    %14 = arith.addf %9, %13 : vector<4x128xf32>
    %15 = arith.mulf %13, %13 : vector<4x128xf32>
    %16 = arith.addf %11, %15 : vector<4x128xf32>
    %c0_10 = arith.constant 0 : index
    %c0_11 = arith.constant 0 : index
    %17 = vector.load %arg7[%c0_10, %c0_11] : memref<4x128xf32, #tpu.memory_space<vmem>>, vector<4x128xf32>
    tpu.vector_store %arg7[%c0_10, %c0_11], %14 {strides = array<i32>} : memref<4x128xf32, #tpu.memory_space<vmem>>, vector<4x128xf32>,
    %c0_12 = arith.constant 0 : index
    %c0_13 = arith.constant 0 : index
    %18 = vector.load %arg8[%c0_12, %c0_13] : memref<4x128xf32, #tpu.memory_space<vmem>>, vector<4x128xf32>
    tpu.vector_store %arg8[%c0_12, %c0_13], %16 {strides = array<i32>} : memref<4x128xf32, #tpu.memory_space<vmem>>, vector<4x128xf32>,
    %c1_i32 = arith.constant 1 : i32
    %19 = arith.cmpi eq, %arg0, %c1_i32 : i32
    %c0_i32_14 = arith.constant 0 : i32
    %20 = arith.cmpi eq, %arg1, %c0_i32_14 : i32
    %21 = arith.andi %19, %20 : i1
    %22 = arith.extui %21 : i1 to i32
    %c0_i32_15 = arith.constant 0 : i32
    %23 = arith.cmpi ne, %22, %c0_i32_15 : i32
    scf.if %23 {
      %c0_16 = arith.constant 0 : index
      %c0_17 = arith.constant 0 : index
      %24 = vector.load %arg7[%c0_16, %c0_17] : memref<4x128xf32, #tpu.memory_space<vmem>>, vector<4x128xf32>
      %cst = arith.constant dense<0.000000e+00> : vector<4xf32>
      %25 = vector.multi_reduction <add>, %24, %cst [1] : vector<4x128xf32> to vector<4xf32>
      %26 = vector.shape_cast %25 : vector<4xf32> to vector<4x1xf32>
      %c0_18 = arith.constant 0 : index
      %c0_19 = arith.constant 0 : index
      %27 = vector.load %arg8[%c0_18, %c0_19] : memref<4x128xf32, #tpu.memory_space<vmem>>, vector<4x128xf32>
      %cst_20 = arith.constant dense<0.000000e+00> : vector<4xf32>
      %28 = vector.multi_reduction <add>, %27, %cst_20 [1] : vector<4x128xf32> to vector<4xf32>
      %29 = vector.shape_cast %28 : vector<4xf32> to vector<4x1xf32>
      %cst_21 = arith.constant 0.001953125 : f32
      %30 = vector.broadcast %cst_21 : f32 to vector<4x1xf32>
      %31 = arith.mulf %26, %30 : vector<4x1xf32>
      %cst_22 = arith.constant 0.001953125 : f32
      %32 = vector.broadcast %cst_22 : f32 to vector<4x1xf32>
      %33 = arith.mulf %29, %32 : vector<4x1xf32>
      %34 = arith.mulf %31, %31 : vector<4x1xf32>
      %35 = arith.subf %33, %34 : vector<4x1xf32>
      %cst_23 = arith.constant 0.000000e+00 : f32
      %36 = vector.broadcast %cst_23 : f32 to vector<4x1xf32>
      %37 = arith.maximumf %35, %36 : vector<4x1xf32>
      %cst_24 = arith.constant 9.99999974E-6 : f32
      %38 = vector.broadcast %cst_24 : f32 to vector<4x1xf32>
      %39 = arith.addf %37, %38 : vector<4x1xf32>
      %40 = math.rsqrt %39 : vector<4x1xf32>
      %c0_25 = arith.constant 0 : index
      %c0_26 = arith.constant 0 : index
      %41 = vector.load %arg3[%c0_25, %c0_26] : memref<4x1xf32, #tpu.memory_space<vmem>>, vector<4x1xf32>
      %c0_27 = arith.constant 0 : index
      %c0_28 = arith.constant 0 : index
      %42 = vector.load %arg4[%c0_27, %c0_28] : memref<4x1xf32, #tpu.memory_space<vmem>>, vector<4x1xf32>
      %43 = arith.mulf %41, %40 : vector<4x1xf32>
      %c0_29 = arith.constant 0 : index
      %c0_30 = arith.constant 0 : index
      %44 = vector.load %arg5[%c0_29, %c0_30] : memref<4x1xf32, #tpu.memory_space<vmem>>, vector<4x1xf32>
      tpu.vector_store %arg5[%c0_29, %c0_30], %43 {strides = array<i32>} : memref<4x1xf32, #tpu.memory_space<vmem>>, vector<4x1xf32>,
      %45 = arith.mulf %31, %43 : vector<4x1xf32>
      %46 = arith.subf %42, %45 : vector<4x1xf32>
      %c0_31 = arith.constant 0 : index
      %c0_32 = arith.constant 0 : index
      %47 = vector.load %arg6[%c0_31, %c0_32] : memref<4x1xf32, #tpu.memory_space<vmem>>, vector<4x1xf32>
      tpu.vector_store %arg6[%c0_31, %c0_32], %46 {strides = array<i32>} : memref<4x1xf32, #tpu.memory_space<vmem>>, vector<4x1xf32>,
    } else {
    }
    return
  }
  func.func @transform_0(%arg0: i32, %arg1: i32) -> (i32, i32, i32) {
    %c0_i32 = arith.constant 0 : i32
    %c0_i32_0 = arith.constant 0 : i32
    return %arg0, %c0_i32, %arg1 : i32, i32, i32
  }
  func.func @transform_1(%arg0: i32, %arg1: i32) -> (i32, i32) {
    %c0_i32 = arith.constant 0 : i32
    %c0_i32_0 = arith.constant 0 : i32
    %c0_i32_1 = arith.constant 0 : i32
    return %c0_i32, %c0_i32_0 : i32, i32
  }
  func.func @transform_2(%arg0: i32, %arg1: i32) -> (i32, i32) {
    %c0_i32 = arith.constant 0 : i32
    %c0_i32_0 = arith.constant 0 : i32
    %c0_i32_1 = arith.constant 0 : i32
    return %c0_i32, %c0_i32_0 : i32, i32
  }
  func.func @transform_3(%arg0: i32, %arg1: i32) -> (i32, i32) {
    %c0_i32 = arith.constant 0 : i32
    %c0_i32_0 = arith.constant 0 : i32
    %c0_i32_1 = arith.constant 0 : i32
    return %c0_i32, %c0_i32_0 : i32, i32
  }
  func.func @transform_4(%arg0: i32, %arg1: i32) -> (i32, i32) {
    %c0_i32 = arith.constant 0 : i32
    %c0_i32_0 = arith.constant 0 : i32
    %c0_i32_1 = arith.constant 0 : i32
    return %c0_i32, %c0_i32_0 : i32, i32
  }
}

</mosaic_0001>

<bundles_post_ra>
// kernel: _batch_norm_2d.3
= control target key start
LH: loop header
LB: loop body
LE: loop exit
PB: predicated region body
PF: predicated region fallthrough
CT: control target
= control target key end

     0   :  { %s407_s12 = smov 0   ;;  %s409_s13 = smov 0   ;;  %s443_s0 = inlined_call_operand.vmem [shape: f32[2,4,256], index: 0, kind: input, shape index: {}]   ;;  %s444_s1 = inlined_call_operand.vmem [shape: f32[4,1], index: 1, kind: input, shape index: {}]   ;;  %s445_s2 = inlined_call_operand.vmem [shape: f32[4,1], index: 2, kind: input, shape index: {}]   ;;  %s446_s3 = inlined_call_operand.vmem [shape: f32[2,4,256], index: 3, kind: output, shape index: {}]  }
   0x1   :  { %s411_s14 = smov 0  }
   0x2 LB: > { %s25_s15 = sadd.s32 1, %s379_s13  ;;  %p325_p0 = scmp.ge.s32.totalorder %s383_s14, 1  ;;  %s383_s14 = sphi %s411_s14, %s13_s14   ;;  %s379_s13 = sphi %s409_s13, %s448_s13   ;;  %s375_s12 = sphi %s407_s12, %s447_s12  }
   0x3   : > { %p27_p1 = scmp.ge.s32.totalorder %s25_s15, 2  ;;  %p158_p2 = scmp.lt.s32.totalorder %s383_s14, 3 }
   0x5   : > { %s450_s15 = smov (%p27_p1, %s25_s15), 0  ;;  %p159_p3 = pnand %p325_p0, %p158_p2 }
   0x6   : > { %p191_p4 = scmp.lt.s32.totalorder (!%p159_p3), %s375_s12, 1 }
   0x7   : > { %162 = sbr.rel (%p159_p3) target bundleno = 142 (0x8e), region = 32 }
   0xc   : > { %v211_v0 = vld [vmem:[%s444_s1] sm:$0xf]  ;;  %v385_v1 = vmov 0   ;;  %s452_s12 = smov (!%p191_p4, %s375_s12), 1  ;;  %v386_v3 = vmov 839922192  }
   0xd   : > { %360 = vset.pattern.permute.xlu0 %v385_v1  ;;  %v222_v2 = vld [vmem:[%s445_s2] sm:$0xf]  ;;  %v217_v4 = vunpack.c.l.s4 %v386_v3  ;;  %s332_s20 = sshll.u32 %s452_s12, 3 }
   0xe   : > { %214 = vperm.xlu0 %360, %v211_v0   ;;  %s198_s23 = scalar_lea.vmem %s443_s0, %s332_s20  ;;  %s208_s26 = scalar_lea.vmem %s446_s3, %s332_s20 }
   0xf   : > { %v218_v6 = vunpack.c.0.s8 %v217_v4  ;;  %v210_v8 = vld [vmem:[%s198_s23] sm:$0xff] }
  0x16   : > { %225 = vperm.xlu0 %360, %v222_v2  }
  0x80   : > { %v215_v5 = vpop.permute.xlu0 %214 }
  0x81   : > { %v219_v7 = vperm.slane %v215_v5, %v218_v6 }
  0x83   : > { %v221_v10 = vmul.f32 %v219_v7, %v210_v8 }
  0x88   : > { %v226_v9 = vpop.permute.xlu0 %225 }
  0x89   : > { %v230_v11 = vperm.slane %v226_v9, %v218_v6 }
  0x8b   : > { %v232_v12 = vadd.f32 %v230_v11, %v221_v10 }
  0x8d   : > { %233 = vst [vmem:[%s208_s26] sm:$0xff] %v232_v12 }
  0x8e PF: > { %s13_s14 = sadd.s32 1, %s383_s14   ;;  %s447_s12 = smov %s379_s13 }
  0x8f   : > { %p10_p5 = scmp.ge.s32.totalorder %s13_s14, 4   ;;  %s448_s13 = smov %s450_s15 }
  0x91   :  { %12 = sbr.rel (!%p10_p5) target bundleno = 2 (0x2), region = 62 }

// kernel: _batch_norm_2d.2
= control target key start
LH: loop header
LB: loop body
LE: loop exit
PB: predicated region body
PF: predicated region fallthrough
CT: control target
= control target key end

     0   :  { %s405_s15 = smov 0   ;;  %s407_s16 = smov 0   ;;  %s453_s0 = inlined_call_operand.vmem [shape: f32[2,4,256], index: 0, kind: input, shape index: {}]   ;;  %s454_s1 = inlined_call_operand.vmem [shape: f32[4,1], index: 1, kind: input, shape index: {}]   ;;  %s455_s2 = inlined_call_operand.vmem [shape: f32[4,1], index: 2, kind: input, shape index: {}]   ;;  %s456_s3 = inlined_call_operand.vmem [shape: f32[4,1], index: 3, kind: output, shape index: {0}]   ;;  %s457_s4 = inlined_call_operand.vmem [shape: f32[4,1], index: 4, kind: output, shape index: {1}]  }
   0x1   :  { %s409_s17 = smov 0  }
   0x2 LB: > { %s27_s18 = sadd.s32 1, %s373_s16  ;;  %p318_p0 = scmp.ge.s32.totalorder %s377_s17, 1  ;;  %s377_s17 = sphi %s409_s17, %s15_s17   ;;  %s373_s16 = sphi %s407_s16, %s459_s16   ;;  %s369_s15 = sphi %s405_s15, %s458_s15  }
   0x3   : > { %p29_p1 = scmp.ge.s32.totalorder %s27_s18, 2  ;;  %p174_p2 = scmp.lt.s32.totalorder %s377_s17, 3 }
   0x5   : > { %s461_s18 = smov (%p29_p1, %s27_s18), 0  ;;  %p175_p3 = pnand %p318_p0, %p174_p2 }
   0x6   : > { %p200_p4 = scmp.lt.s32.totalorder (!%p175_p3), %s369_s15, 1  ;;  %p209_p5 = scmp.eq.s32.totalorder (!%p175_p3), %s369_s15, 0 }
   0x7   : > { %178 = sbr.rel (%p175_p3) target bundleno = 191 (0xbf), region = 32 }
   0xc   : > { %s201_s19 = scalar_select %p200_p4, %s369_s15, 1  ;;  %v379_v0 = vmov (%p209_p5), 0.0  }
   0xd   : > { %214 = sbr.rel (!%p209_p5) target bundleno = 18 (0x12), region = 36  ;;  %215 = vst [vmem:[#allocation2] sm:$0xf] (%p209_p5), %v379_v0 }
   0xe   : > { %s325_s20 = sshll.u32 %s201_s19, 3  ;;  %216 = vst [vmem:[#allocation3] sm:$0xf] (%p209_p5), %v379_v0 }
   0xf   : > { %s207_s23 = scalar_lea.vmem %s453_s0, %s325_s20 }
  0x12 PF: > { %v219_v2 = vld [vmem:[%s207_s23] sm:$0xf]  ;;  %v223_v3 = vld [vmem:[%s207_s23 + $0x4] sm:$0xf]  ;;  %p229_p6 = scmp.eq.s32.totalorder %s369_s15, 1 }
  0x13   : > { %v221_v6 = vmul.f32 %v219_v2, %v219_v2  ;;  %v225_v7 = vmul.f32 %v223_v3, %v223_v3  ;;  %vm235_vm0 = vcmask (%p229_p6), 1043456   ;;  %v259_v28 = vld [vmem:[%s454_s1] sm:$0xf] (%p229_p6)  ;;  %vm262_vm4 = vcmask (%p229_p6), 3072  }
  0x14   : > { %v217_v1 = vld [vmem:[#allocation2] sm:$0xf] }
  0x15   : > { %v220_v4 = vadd.f32 %v219_v2, %v217_v1  ;;  %v218_v5 = vld [vmem:[#allocation3] sm:$0xf]  ;;  %v260_v32 = vld [vmem:[%s455_s2] sm:$0xf] (%p229_p6) }
  0x16   : > { %v222_v9 = vadd.f32 %v221_v6, %v218_v5  ;;  %233 = sbr.rel (!%p229_p6) target bundleno = 191 (0xbf), region = 40 }
  0x17   : > { %v224_v8 = vadd.f32 %v223_v3, %v220_v4 }
  0x18   : > { %v226_v10 = vadd.f32 %v225_v7, %v222_v9 }
  0x19   : > { %227 = vst [vmem:[#allocation2] sm:$0xf] %v224_v8 }
  0x1a   : > { %228 = vst [vmem:[#allocation3] sm:$0xf] %v226_v10 }
  0x20   : > { %v234_v11 = vld [vmem:[#allocation2] sm:$0xf] }
  0x21   : > { %v236_v12 = vsel %vm235_vm0, %v234_v11, 0.0  ;;  %v239_v13 = vld [vmem:[#allocation3] sm:$0xf] }
  0x22   : > { %237 = vadd.xlane.f32.xlu0 %v236_v12  ;;  %v240_v14 = vsel %vm235_vm0, %v239_v13, 0.0 }
  0x2a   : > { %241 = vadd.xlane.f32.xlu0 %v240_v14 }
  0x95   : > { %v238_v15 = vpop.xlane.xlu0 %237 }
  0x96   : > { %v243_v16 = vmul.f32 0.001953125, %v238_v15 }
  0x98   : > { %v245_v18 = vmul.f32 %v243_v16, %v243_v16 }
  0x9d   : > { %v242_v17 = vpop.xlane.xlu0 %241 }
  0x9e   : > { %v244_v19 = vmul.f32 0.001953125, %v242_v17 }
  0xa0   : > { %v246_v20 = vsub.f32 %v244_v19, %v245_v18 }
  0xa2   : > { %v247_v21 = vmax.f32 %v246_v20, 0.0 }
  0xa4   : > { %v248_v22 = vadd.f32 1e-05, %v247_v21 }
  0xa6   : > { %353 = vrsqrt.f32 %v248_v22  ;;  %vm255_vm2 = vweird.f32 %v248_v22 }
  0xac   : > { %v354_v23 = vpop.eup %353 }
  0xad   : > { %v250_v24 = vmul.f32 %v354_v23, %v248_v22  ;;  %vm256_vm1 = vweird.f32 %v354_v23 }
  0xae   : > { %vm257_vm3 = vmor %vm255_vm2, %vm256_vm1 }
  0xaf   : > { %v251_v25 = vmul.f32 %v354_v23, %v250_v24 }
  0xb1   : > { %v252_v26 = vmul.f32 0.5, %v251_v25 }
  0xb3   : > { %v253_v27 = vsub.f32 1.5, %v252_v26 }
  0xb5   : > { %v254_v29 = vmul.f32 %v354_v23, %v253_v27 }
  0xb7   : > { %v258_v30 = vsel %vm257_vm3, %v354_v23, %v254_v29 }
  0xb8   : > { %v261_v31 = vmul.f32 %v259_v28, %v258_v30 }
  0xba   : > { %263 = vst.msk [vmem:[%s456_s3] sm:$0xf] %vm262_vm4, %v261_v31  ;;  %v264_v33 = vmul.f32 %v261_v31, %v243_v16 }
  0xbc   : > { %v265_v34 = vsub.f32 %v260_v32, %v264_v33 }
  0xbe   : > { %266 = vst.msk [vmem:[%s457_s4] sm:$0xf] %vm262_vm4, %v265_v34 }
  0xbf PF: > { %s15_s17 = sadd.s32 1, %s377_s17   ;;  %s458_s15 = smov %s373_s16 }
  0xc0   : > { %p12_p7 = scmp.ge.s32.totalorder %s15_s17, 4   ;;  %s459_s16 = smov %s461_s18 }
  0xc2   :  { %14 = sbr.rel (!%p12_p7) target bundleno = 2 (0x2), region = 74 }

</bundles_post_ra>
